<compile_context>
chip_gen: v6e
topology: v6e:2x2x1
jax: 0.10.0
libtpu: 0.0.40
codegen_flags: <defaults>
</compile_context>

<pallas_src>
import jax
import jax.numpy as jnp
from jax.experimental import pallas as pl
from jax.experimental.pallas import tpu as pltpu


# ----------------------------------------------------------------------------
# Kernel
# ----------------------------------------------------------------------------
def _input_process_kernel(x_ref, w_ref, b_ref, o_ref):
    """One frame-tile of the fused permute + linear.

    x_ref: (bs, TT, F)        slab of the ORIGINAL (bs, nframes, F) input, f32
    w_ref: (F, D)             weight.T, bf16, resident across the grid
    b_ref: (1, D)             bias, f32
    o_ref: (TT, bs*D)         lane-dense slab of the (nframes, bs*D) output
    """
    bs, tt, f = x_ref.shape
    d = w_ref.shape[1]

    # Batch-major / frame-minor rows -> ONE MXU matmul over all bs*tt rows.
    x2 = x_ref[...].reshape(bs * tt, f).astype(w_ref.dtype)
    acc = jnp.dot(x2, w_ref[...], preferred_element_type=jnp.float32)  # (bs*tt, D)
    acc = acc + b_ref[...]                       # (1, D) broadcasts on lanes

    # Lane-dense stores: batch b's (tt, D) slab goes to lane offset b*D.
    # Static Python loop (bs is a compile-time constant); no sublane relayout.
    for b in range(bs):
        o_ref[:, b * d:(b + 1) * d] = acc[b * tt:(b + 1) * tt, :].astype(o_ref.dtype)


# ----------------------------------------------------------------------------
# Tiling / VMEM budgeting
# ----------------------------------------------------------------------------
def _round_up(v, m):
    return ((v + m - 1) // m) * m


_VMEM_PIPELINE_BUDGET = 32 * 1024 * 1024   # pipelined-buffer budget (all gens)
_VMEM_LIMIT_BYTES = 48 * 1024 * 1024       # < v7x 64 MiB physical per-TC VMEM,
                                           # lifts v5e's 16 MiB scoped default


def _choose_frame_tile(nframes, bs, input_feats, latent_dim,
                       x_itemsize=4, w_itemsize=2, out_itemsize=4,
                       budget=_VMEM_PIPELINE_BUDGET):
    """Frame-tile size TT, budgeted from PADDED VMEM bytes (not raw rows)."""
    if nframes <= 8:
        return nframes

    f_pad = _round_up(input_feats, 128)           # x lane padding
    d_pad = _round_up(latent_dim, 128)            # weight / bias lane padding
    od_pad = _round_up(bs * latent_dim, 128)      # output lane padding

    # Resident weight + bias (the pipeline still allocates 2 buffers each).
    fixed = 2 * (_round_up(input_feats, 8) * d_pad * w_itemsize
                 + 8 * d_pad * 4)
    # Per frame of TT: double-buffered x slab + double-buffered output slab.
    per_frame = 2 * (bs * f_pad * x_itemsize + od_pad * out_itemsize)

    avail = max(budget - fixed, 8 * per_frame)
    tt = max(8, (avail // per_frame) // 8 * 8)

    # Keep >= 2 grid steps so both v7x TensorCores get frame tiles.
    if nframes >= 16:
        tt = min(tt, _round_up(pl.cdiv(nframes, 2), 8))

    return min(tt, _round_up(nframes, 8))


# ----------------------------------------------------------------------------
# Wrapper
# ----------------------------------------------------------------------------
def prepare_params(weight, bias, compute_dtype=jnp.bfloat16):
    """Hoist the weight transpose / cast out of the per-call path.

    weight: (latent_dim, input_feats)  PyTorch nn.Linear layout
    bias:   (latent_dim,)
    Returns (w_t, b2) consumed by input_process_forward.
    """
    w_t = jnp.asarray(weight).T.astype(compute_dtype)        # (F, D)
    b2 = jnp.asarray(bias).reshape(1, -1).astype(jnp.float32)  # (1, D)
    return w_t, b2


def input_process_forward(x, w_t, b2):
    """Pallas implementation of InputProcess.forward.

    Args:
      x:   (bs, nframes, input_feats) float32
      w_t: (input_feats, latent_dim)  bf16 (from prepare_params)
      b2:  (1, latent_dim)            float32
    Returns:
      (nframes, bs, latent_dim) float32
    """
    bs, nframes, input_feats = x.shape
    latent_dim = w_t.shape[1]

    tt = _choose_frame_tile(nframes, bs, input_feats, latent_dim)
    grid = (pl.cdiv(nframes, tt),)

    cost = pl.CostEstimate(
        flops=int(2 * bs * nframes * input_feats * latent_dim),
        transcendentals=0,
        bytes_accessed=int(4 * bs * nframes * input_feats
                           + 2 * input_feats * latent_dim
                           + 4 * latent_dim
                           + 4 * bs * nframes * latent_dim),
    )

    out2d = pl.pallas_call(
        _input_process_kernel,
        out_shape=jax.ShapeDtypeStruct((nframes, bs * latent_dim), x.dtype),
        grid_spec=pltpu.PrefetchScalarGridSpec(
            num_scalar_prefetch=0,
            grid=grid,
            in_specs=[
                # x walked in its ORIGINAL (bs, nframes, F) layout (fused permute)
                pl.BlockSpec((bs, tt, input_feats), lambda t: (0, t, 0)),
                # weight / bias: constant block index -> fetched once, resident
                pl.BlockSpec((input_feats, latent_dim), lambda t: (0, 0)),
                pl.BlockSpec((1, latent_dim), lambda t: (0, 0)),
            ],
            # lane-dense 2D output: (nframes, bs*D)
            out_specs=pl.BlockSpec((tt, bs * latent_dim), lambda t: (t, 0)),
        ),
        compiler_params=pltpu.CompilerParams(
            dimension_semantics=("parallel",),        # independent frame tiles
            vmem_limit_bytes=_VMEM_LIMIT_BYTES),
        cost_estimate=cost,
    )(x, w_t, b2)

    # Free reshape: row-major (nframes, bs*D) == (nframes, bs, D).
    return out2d.reshape(nframes, bs, latent_dim)


# ----------------------------------------------------------------------------
# Demo / self-test
# ----------------------------------------------------------------------------
if __name__ == "__main__":
    # Small shapes consistent with the module's forward.
    bs, nframes = 2, 8
    input_feats, latent_dim = 16, 32

    key = jax.random.PRNGKey(0)
    kx, kw, kb = jax.random.split(key, 3)

    x = jax.random.normal(kx, (bs, nframes, input_feats), dtype=jnp.float32)

    # deterministic param init (mimics nn.Linear's uniform(-1/sqrt(F), 1/sqrt(F)))
    bound = 1.0 / (input_feats ** 0.5)
    weight = jax.random.uniform(kw, (latent_dim, input_feats),
                                minval=-bound, maxval=bound, dtype=jnp.float32)
    bias = jax.random.uniform(kb, (latent_dim,),
                              minval=-bound, maxval=bound, dtype=jnp.float32)

    # One-time param prep (transpose + bf16 cast hoisted out of the call path).
    w_t, b2 = prepare_params(weight, bias)

    out = jax.jit(input_process_forward)(x, w_t, b2)
    out = jax.block_until_ready(out)

    # reference check in plain JAX (f32); bf16 MXU inputs -> loose tolerance
    ref = jnp.einsum("tbf,df->tbd", jnp.transpose(x, (1, 0, 2)), weight) + bias
    assert out.shape == (nframes, bs, latent_dim)
    assert jnp.allclose(out, ref, atol=2e-2, rtol=2e-2)

    print("KERNEL_OK")
</pallas_src>

<mosaic_0001>
module attributes {stable_mosaic.version = 11 : i64} {
  func.func @_input_process_kernel(%arg0: i32, %arg1: memref<2x8x16xf32, #tpu.memory_space<vmem>>, %arg2: memref<16x32xbf16, #tpu.memory_space<vmem>>, %arg3: memref<1x32xf32, #tpu.memory_space<vmem>>, %arg4: memref<8x64xf32, #tpu.memory_space<vmem>>) attributes {dimension_semantics = [#tpu.dimension_semantics<parallel>], iteration_bounds = array<i64: 1>, scalar_prefetch = 0 : i64, scratch_operands = 0 : i64, tpu.core_type = #tpu.core_type<tc>, window_params = [{transform_indices = @transform_0, window_bounds = array<i64: 2, 8, 16>}, {pipeline_mode = #tpu.pipeline_mode<synchronous>, transform_indices = @transform_1, window_bounds = array<i64: 16, 32>}, {pipeline_mode = #tpu.pipeline_mode<synchronous>, transform_indices = @transform_2, window_bounds = array<i64: 1, 32>}, {transform_indices = @transform_3, window_bounds = array<i64: 8, 64>}]} {
    %c0 = arith.constant 0 : index
    %c0_0 = arith.constant 0 : index
    %c0_1 = arith.constant 0 : index
    %0 = vector.load %arg1[%c0, %c0_0, %c0_1] : memref<2x8x16xf32, #tpu.memory_space<vmem>>, vector<2x8x16xf32>
    %1 = vector.shape_cast %0 : vector<2x8x16xf32> to vector<16x16xf32>
    %2 = arith.truncf %1 : vector<16x16xf32> to vector<16x16xbf16>
    %c0_2 = arith.constant 0 : index
    %c0_3 = arith.constant 0 : index
    %3 = vector.load %arg2[%c0_2, %c0_3] : memref<16x32xbf16, #tpu.memory_space<vmem>>, vector<16x32xbf16>
    %cst = arith.constant dense<0.000000e+00> : vector<16x32xf32>
    %4 = tpu.matmul %2, %3, %cst {dimension_numbers = #tpu.dot_dimension_numbers<[1], [0], [0], [1], [0, 0, 1, 1], [], []>} : vector<16x16xbf16>, vector<16x32xbf16>, vector<16x32xf32> -> vector<16x32xf32>
    %c0_4 = arith.constant 0 : index
    %c0_5 = arith.constant 0 : index
    %5 = vector.load %arg3[%c0_4, %c0_5] : memref<1x32xf32, #tpu.memory_space<vmem>>, vector<1x32xf32>
    %6 = vector.broadcast %5 : vector<1x32xf32> to vector<16x32xf32>
    %7 = arith.addf %4, %6 : vector<16x32xf32>
    %8 = vector.extract_strided_slice %7 {offsets = [0, 0], sizes = [8, 32], strides = [1, 1]} : vector<16x32xf32> to vector<8x32xf32>
    %c0_6 = arith.constant 0 : index
    %c0_7 = arith.constant 0 : index
    %9 = vector.load %arg4[%c0_6, %c0_7] : memref<8x64xf32, #tpu.memory_space<vmem>>, vector<8x32xf32>
    tpu.vector_store %arg4[%c0_6, %c0_7], %8 {strides = array<i32>} : memref<8x64xf32, #tpu.memory_space<vmem>>, vector<8x32xf32>,
    %10 = vector.extract_strided_slice %7 {offsets = [8, 0], sizes = [8, 32], strides = [1, 1]} : vector<16x32xf32> to vector<8x32xf32>
    %c0_8 = arith.constant 0 : index
    %c32 = arith.constant 32 : index
    %11 = vector.load %arg4[%c0_8, %c32] : memref<8x64xf32, #tpu.memory_space<vmem>>, vector<8x32xf32>
    tpu.vector_store %arg4[%c0_8, %c32], %10 {strides = array<i32>} : memref<8x64xf32, #tpu.memory_space<vmem>>, vector<8x32xf32>,
    return
  }
  func.func @transform_0(%arg0: i32) -> (i32, i32, i32) {
    %c0_i32 = arith.constant 0 : i32
    %c0_i32_0 = arith.constant 0 : i32
    %c0_i32_1 = arith.constant 0 : i32
    return %c0_i32, %arg0, %c0_i32_0 : i32, i32, i32
  }
  func.func @transform_1(%arg0: i32) -> (i32, i32) {
    %c0_i32 = arith.constant 0 : i32
    %c0_i32_0 = arith.constant 0 : i32
    %c0_i32_1 = arith.constant 0 : i32
    return %c0_i32, %c0_i32_0 : i32, i32
  }
  func.func @transform_2(%arg0: i32) -> (i32, i32) {
    %c0_i32 = arith.constant 0 : i32
    %c0_i32_0 = arith.constant 0 : i32
    %c0_i32_1 = arith.constant 0 : i32
    return %c0_i32, %c0_i32_0 : i32, i32
  }
  func.func @transform_3(%arg0: i32) -> (i32, i32) {
    %c0_i32 = arith.constant 0 : i32
    %c0_i32_0 = arith.constant 0 : i32
    return %arg0, %c0_i32 : i32, i32
  }
}

</mosaic_0001>

<bundles_post_ra>
// kernel: input_process_forward.1
= control target key start
LH: loop header
LB: loop body
LE: loop exit
PB: predicated region body
PF: predicated region fallthrough
CT: control target
= control target key end

     0   :  { %8 = vsyncpa [#allocation3], 0  ;;  %s229_s0 = inlined_call_operand.hbm [shape: f32[2,8,16], index: 0, kind: input, shape index: {}]   ;;  %s230_s1 = inlined_call_operand.hbm [shape: bf16[16,32], index: 1, kind: input, shape index: {}]   ;;  %s231_s2 = inlined_call_operand.vmem [shape: f32[1,32], index: 2, kind: input, shape index: {}]   ;;  %s232_s3 = inlined_call_operand.vmem [shape: f32[8,64], index: 3, kind: output, shape index: {}]  }
   0x1   :  { %9 = vsyncpa [#allocation5], 0  ;;  %s185_s12 = smov [#allocation2]  }
   0x2   :  { %s15_s13 = sshll.u32 %s185_s12, 4  ;;  %s16_s13 = int_to_ptr.vmem [resolvable:$true] %s15_s13 }
   0x3   :  { %s149_s14 = scalar_lea.vmem %s16_s13, 256  ;;  %p154_p1 = scmp.lt.s32.totalorder %s16_s13, %s16_s13 }
   0x4   :  { %p150_p0 = scmp.ne.s32.totalorder %s16_s13, %s149_s14  ;;  %p155_p2 = scmp.lt.s32.totalorder %s149_s14, %s149_s14 }
   0x6   :  { %p156_p3 = por %p155_p2, %p154_p1 }
   0x8   :  { %p157_p4 = pnand %p156_p3, %p150_p0 }
   0xa   :  { %160 = shalt.err (!%p157_p4)
}
   0xb   :  { %s186_s15 = smov 128   ;;  %s187_s16 = smov 8  }
   0xc   :  { %21 = dma.hbm_to_vmem [thread:$0]  %s229_s0, 256, %s16_s13, [#allocation3], %s186_s15, %s186_s15, %s187_s16  }
   0xd   :  { %s188_s19 = smov [#allocation4]  }
   0xe   :  { %s27_s20 = sshll.u32 %s188_s19, 4  ;;  %s28_s20 = int_to_ptr.vmem [resolvable:$true] %s27_s20 }
   0xf   :  { %s169_s21 = scalar_lea.vmem %s28_s20, 128  ;;  %p174_p6 = scmp.lt.s32.totalorder %s28_s20, %s28_s20 }
  0x10   :  { %p170_p5 = scmp.ne.s32.totalorder %s28_s20, %s169_s21  ;;  %p175_p7 = scmp.lt.s32.totalorder %s169_s21, %s169_s21 }
  0x12   :  { %p176_p8 = por %p175_p7, %p174_p6 }
  0x14   :  { %p177_p9 = pnand %p176_p8, %p170_p5 }
  0x16   :  { %180 = shalt.err (!%p177_p9)
}
  0x17   :  { %s189_s22 = smov 64   ;;  %s190_s23 = smov 4  }
  0x18   :  { %33 = dma.hbm_to_vmem [thread:$0]  %s230_s1, 128, %s28_s20, [#allocation5], %s189_s22, %s189_s22, %s190_s23  }
  0x19   :  { %181 = dma.done.wait [#allocation3], 256  }
  0x1a   :  { %182 = vsyncadd [#allocation3], 4294967040 }
  0x1b   :  { %183 = dma.done.wait [#allocation5], 128  }
  0x1c   :  { %184 = vsyncadd [#allocation5], 4294967168  ;;  %v191_v0 = vmov 0.0   ;;  %vm192_vm0 = vmmov 0   ;;  %v140_v1 = vld [vmem:[#allocation4] sm:$0xff]   ;;  %v43_v2 = vld [vmem:[#allocation2] sm:$0xff] }
  0x1d   :  { %125 = vmatprep.subr.bf16.mxu0 %v191_v0  ;;  %127 = vmatprep.mubr.msk.bf16.mxu0 %vm192_vm0, %v191_v0  ;;  %v44_v3 = vld [vmem:[#allocation2 + $0x8] sm:$0xff]  ;;  %vm61_vm1 = vcmask 130048   ;;  %v120_v5 = vld [vmem:[%s231_s2] ss:$0 sm:$0xff]  ;;  %vm106_vm2 = vcmask 261120   ;;  %s193_s28 = smov 32  }
  0x1e   :  { %126 = vmatpush3.bf16.msra.mxu0 %v140_v1  ;;  %v45_v4 = vpack.c.bf16 %v44_v3, %v43_v2  ;;  %vm112_vm3 = vcmask 523520  }
  0x21   :  { %128 = vmatmul.mubr.msk.bf16.vlgmr.msra.gmra.mxu0 %vm61_vm1, %v45_v4 }
  0xe1   :  { %v99_v6 = vpop.f32.mrf.mxu0 }
  0xe2   :  { %v100_v7 = vadd.f32 %v120_v5, %v99_v6 }
  0xe3   :  { %v129_v8 = vpop.f32.mrf.mxu0 }
  0xe4   :  { %107 = vst.msk [vmem:[%s232_s3] sm:$0xff] %vm106_vm2, %v100_v7 }
  0xe5   :  { %v102_v9 = vpop.f32.mrf.mxu0 }
  0xe6   :  { %v103_v10 = vadd.f32 %v120_v5, %v102_v9 }
  0xe7   :  { %v130_v11 = vpop.f32.mrf.mxu0 }
  0xe8   :  { %109 = vrot.lane.b32.xlu0 %v103_v10, %s193_s28 }
 0x15a   :  { %v110_v12 = vpop.permute.xlu0 %109 }
 0x15b   :  { %113 = vst.msk [vmem:[%s232_s3] sm:$0xff] %vm112_vm3, %v110_v12 }
 0x15c   :  { %118 = vsyncpa [#allocation3], 1 }
 0x15d   :  { %119 = vsyncpa [#allocation5], 1 }

</bundles_post_ra>
